<compile_context>
chip_gen: v5e
topology: v5e:2x2
jax: 0.10.0
libtpu: 0.0.40
codegen_flags: <defaults>
</compile_context>

<pallas_src>
import math

import jax
import jax.numpy as jnp
from jax.experimental import pallas as pl
from jax.experimental.pallas import tpu as pltpu


def _round_up(a, b):
    return ((a + b - 1) // b) * b


# ---------------------------------------------------------------------------
# Kernel 1: support = x @ W   (hoisted out of the propagation kernel)
# ---------------------------------------------------------------------------
def support_kernel(x_ref, w_ref, o_ref):
    o_ref[...] = jnp.dot(
        x_ref[...], w_ref[...], preferred_element_type=jnp.float32
    ).astype(o_ref.dtype)


# ---------------------------------------------------------------------------
# Kernel 2: out = adj @ support + bias   (K-tiled, f32 accumulator)
# ---------------------------------------------------------------------------
def propagate_kernel(adj_ref, sup_ref, b_ref, out_ref, acc_ref):
    k = pl.program_id(1)

    @pl.when(k == 0)
    def _():
        acc_ref[...] = jnp.zeros_like(acc_ref)

    acc_ref[...] += jnp.dot(
        adj_ref[...], sup_ref[...], preferred_element_type=jnp.float32
    )

    @pl.when(k == pl.num_programs(1) - 1)
    def _():
        # Bias add only once per output row-tile (epilogue, not per K step).
        out_ref[...] = (acc_ref[...] + b_ref[...]).astype(out_ref.dtype)


def gcn_encoder_forward(
    x,
    adj,
    weight,
    bias=None,
    *,
    tile_m=256,
    tile_k=512,
    matmul_dtype=jnp.bfloat16,
):
    """Pallas implementation of GraphConvolutionEncoder.forward."""
    n, f_in = x.shape
    f_out = weight.shape[1]
    assert adj.shape == (n, n)

    out_dtype = x.dtype
    out_itemsize = jnp.dtype(out_dtype).itemsize

    # Lane-dense output: pad F_out up to a multiple of 128.
    f_pad = _round_up(f_out, 128)

    # Tile sizes, clamped for small graphs; keep (8, 128) alignment.
    tile_m = min(tile_m, _round_up(n, 8))
    tile_k = min(tile_k, _round_up(n, 128))
    n_pad_m = _round_up(n, tile_m)  # padded row dim of adj / out
    n_pad_k = _round_up(n, tile_k)  # padded contraction dim

    # Pad inputs with zeros (zeros contribute nothing to either matmul).
    x_p = jnp.zeros((n_pad_k, f_in), x.dtype).at[:n, :].set(x)
    w_p = jnp.zeros((f_in, f_pad), weight.dtype).at[:, :f_out].set(weight)
    adj_p = (
        jnp.zeros((n_pad_m, n_pad_k), matmul_dtype)
        .at[:n, :n]
        .set(adj.astype(matmul_dtype))
    )
    if bias is None:
        b_p = jnp.zeros((1, f_pad), jnp.float32)
    else:
        b_p = (
            jnp.zeros((1, f_pad), jnp.float32)
            .at[0, :f_out]
            .set(bias.astype(jnp.float32))
        )

    # ---- support = x @ W (row-tiled to match the K tiles of propagation) ----
    support = pl.pallas_call(
        support_kernel,
        out_shape=jax.ShapeDtypeStruct((n_pad_k, f_pad), matmul_dtype),
        grid_spec=pltpu.PrefetchScalarGridSpec(
            num_scalar_prefetch=0,
            grid=(n_pad_k // tile_k,),
            in_specs=[
                pl.BlockSpec((tile_k, f_in), lambda i: (i, 0)),
                pl.BlockSpec((f_in, f_pad), lambda i: (0, 0)),
            ],
            out_specs=pl.BlockSpec((tile_k, f_pad), lambda i: (i, 0)),
        ),
        compiler_params=pltpu.CompilerParams(
            dimension_semantics=("parallel",),
            vmem_limit_bytes=32 * 1024 * 1024,
        ),
        cost_estimate=pl.CostEstimate(
            flops=2 * n_pad_k * f_in * f_pad,
            transcendentals=0,
            bytes_accessed=(
                x_p.size * x_p.dtype.itemsize
                + w_p.size * w_p.dtype.itemsize
                + n_pad_k * f_pad * jnp.dtype(matmul_dtype).itemsize
            ),
        ),
    )(x_p, w_p)

    # ---- out = adj @ support + bias -----------------------------------------
    grid = (n_pad_m // tile_m, n_pad_k // tile_k)
    out_p = pl.pallas_call(
        propagate_kernel,
        out_shape=jax.ShapeDtypeStruct((n_pad_m, f_pad), out_dtype),
        grid_spec=pltpu.PrefetchScalarGridSpec(
            num_scalar_prefetch=0,
            grid=grid,
            in_specs=[
                # adjacency tile (tile_m, tile_k)
                pl.BlockSpec((tile_m, tile_k), lambda i, k: (i, k)),
                # support K-tile (tile_k, f_pad)
                pl.BlockSpec((tile_k, f_pad), lambda i, k: (k, 0)),
                # bias (broadcast over rows, added only in finalize)
                pl.BlockSpec((1, f_pad), lambda i, k: (0, 0)),
            ],
            out_specs=pl.BlockSpec((tile_m, f_pad), lambda i, k: (i, 0)),
            scratch_shapes=[pltpu.VMEM((tile_m, f_pad), jnp.float32)],
        ),
        compiler_params=pltpu.CompilerParams(
            # Row-tile axis is independent -> megacore-shardable on v7x;
            # reduction (K) axis is last and marked arbitrary.
            dimension_semantics=("parallel", "arbitrary"),
            vmem_limit_bytes=32 * 1024 * 1024,
        ),
        cost_estimate=pl.CostEstimate(
            flops=2 * n_pad_m * n_pad_k * f_pad,
            transcendentals=0,
            bytes_accessed=(
                adj_p.size * adj_p.dtype.itemsize
                + n_pad_k * f_pad * jnp.dtype(matmul_dtype).itemsize
                + n_pad_m * f_pad * out_itemsize
                + f_pad * 4
            ),
        ),
    )(adj_p, support, b_p)

    # Slice padding away (lane-dense inside the kernel, exact shape outside).
    return out_p[:n, :f_out]


def init_params(key, in_features, out_features):
    """Deterministic re-implementation of reset_parameters()."""
    stdv = 1.0 / math.sqrt(out_features)
    kw, kb = jax.random.split(key)
    weight = jax.random.uniform(
        kw, (in_features, out_features), jnp.float32, minval=-stdv, maxval=stdv
    )
    bias = jax.random.uniform(
        kb, (out_features,), jnp.float32, minval=-stdv, maxval=stdv
    )
    return weight, bias


if __name__ == "__main__":
    key = jax.random.PRNGKey(0)
    k_x, k_adj, k_p = jax.random.split(key, 3)

    # Small shapes; N deliberately NOT a multiple of the tile sizes to exercise
    # the padding path.
    n_nodes = 200
    in_features = 48
    out_features = 32

    x = jax.random.normal(k_x, (n_nodes, in_features), jnp.float32)

    # Simple symmetric, row-normalized dense adjacency (GCN propagation matrix)
    # — torch.spmm semantics, densified.
    a = (jax.random.uniform(k_adj, (n_nodes, n_nodes)) < 0.1).astype(jnp.float32)
    a = jnp.maximum(a, a.T) + jnp.eye(n_nodes, dtype=jnp.float32)
    adj = a / jnp.sum(a, axis=1, keepdims=True)

    weight, bias = init_params(k_p, in_features, out_features)

    out = gcn_encoder_forward(x, adj, weight, bias)
    out = jax.block_until_ready(out)

    # Reference check against plain JAX (same math as the torch forward).
    # Tolerance accounts for the bf16 cast of adj/support (f32 accumulation).
    ref = adj @ (x @ weight) + bias
    assert out.shape == (n_nodes, out_features)
    assert jnp.allclose(out, ref, atol=2e-2, rtol=2e-2), (
        float(jnp.max(jnp.abs(out - ref)))
    )

    print("KERNEL_OK")
</pallas_src>

<mosaic_0001>
module attributes {stable_mosaic.version = 11 : i64} {
  func.func @support_kernel(%arg0: i32, %arg1: memref<256x48xf32, #tpu.memory_space<vmem>>, %arg2: memref<48x128xf32, #tpu.memory_space<vmem>>, %arg3: memref<256x128xbf16, #tpu.memory_space<vmem>>) attributes {dimension_semantics = [#tpu.dimension_semantics<parallel>], iteration_bounds = array<i64: 1>, scalar_prefetch = 0 : i64, scratch_operands = 0 : i64, tpu.core_type = #tpu.core_type<tc>, window_params = [{transform_indices = @transform_0, window_bounds = array<i64: 256, 48>}, {pipeline_mode = #tpu.pipeline_mode<synchronous>, transform_indices = @transform_1, window_bounds = array<i64: 48, 128>}, {transform_indices = @transform_2, window_bounds = array<i64: 256, 128>}]} {
    %c0 = arith.constant 0 : index
    %c0_0 = arith.constant 0 : index
    %0 = vector.load %arg1[%c0, %c0_0] : memref<256x48xf32, #tpu.memory_space<vmem>>, vector<256x48xf32>
    %c0_1 = arith.constant 0 : index
    %c0_2 = arith.constant 0 : index
    %1 = vector.load %arg2[%c0_1, %c0_2] : memref<48x128xf32, #tpu.memory_space<vmem>>, vector<48x128xf32>
    %cst = arith.constant dense<0.000000e+00> : vector<256x128xf32>
    %2 = tpu.matmul %0, %1, %cst {dimension_numbers = #tpu.dot_dimension_numbers<[1], [0], [0], [1], [0, 0, 1, 1], [], []>} : vector<256x48xf32>, vector<48x128xf32>, vector<256x128xf32> -> vector<256x128xf32>
    %3 = arith.truncf %2 : vector<256x128xf32> to vector<256x128xbf16>
    %c0_3 = arith.constant 0 : index
    %c0_4 = arith.constant 0 : index
    %4 = vector.load %arg3[%c0_3, %c0_4] : memref<256x128xbf16, #tpu.memory_space<vmem>>, vector<256x128xbf16>
    tpu.vector_store %arg3[%c0_3, %c0_4], %3 {strides = array<i32>} : memref<256x128xbf16, #tpu.memory_space<vmem>>, vector<256x128xbf16>,
    return
  }
  func.func @transform_0(%arg0: i32) -> (i32, i32) {
    %c0_i32 = arith.constant 0 : i32
    %c0_i32_0 = arith.constant 0 : i32
    return %arg0, %c0_i32 : i32, i32
  }
  func.func @transform_1(%arg0: i32) -> (i32, i32) {
    %c0_i32 = arith.constant 0 : i32
    %c0_i32_0 = arith.constant 0 : i32
    %c0_i32_1 = arith.constant 0 : i32
    return %c0_i32, %c0_i32_0 : i32, i32
  }
  func.func @transform_2(%arg0: i32) -> (i32, i32) {
    %c0_i32 = arith.constant 0 : i32
    %c0_i32_0 = arith.constant 0 : i32
    return %arg0, %c0_i32 : i32, i32
  }
}

</mosaic_0001>

<bundles_post_ra>
// kernel: tpu_custom_call.1
= control target key start
LH: loop header
LB: loop body
LE: loop exit
PB: predicated region body
PF: predicated region fallthrough
CT: control target
= control target key end

     0   :  { %s683_s0 = inlined_call_operand.vmem [shape: f32[256,48], index: 0, kind: input, shape index: {}]   ;;  %s684_s1 = inlined_call_operand.vmem [shape: f32[48,128], index: 1, kind: input, shape index: {}]   ;;  %s685_s2 = inlined_call_operand.hbm [shape: bf16[256,128], index: 2, kind: output, shape index: {}]  }
   0x1   :  { %v49_v0 = vld [vmem:[%s684_s1 + $0x28] sm:$0xff]  ;;  %v48_v1 = vld [vmem:[%s684_s1 + $0x20] sm:$0xff]  ;;  %v47_v2 = vld [vmem:[%s684_s1 + $0x18] sm:$0xff] }
   0x2   :  { %157 = vmatpush.msra.mxu0 %v49_v0  ;;  %469 = vmatpush.msra.mxu1 %v49_v0  ;;  %v46_v3 = vld [vmem:[%s684_s1 + $0x10] sm:$0xff]  ;;  %v45_v4 = vld [vmem:[%s684_s1 + $0x8] sm:$0xff] }
   0x3   :  { %470 = vmatpush.msra.mxu2 %v49_v0  ;;  %471 = vmatpush.msra.mxu3 %v49_v0 }
   0x4   :  { %158 = vmatpush.msra.mxu0 %v48_v1  ;;  %472 = vmatpush.msra.mxu1 %v48_v1 }
   0x5   :  { %473 = vmatpush.msra.mxu2 %v48_v1  ;;  %474 = vmatpush.msra.mxu3 %v48_v1 }
   0x6   :  { %159 = vmatpush.msra.mxu0 %v47_v2  ;;  %475 = vmatpush.msra.mxu1 %v47_v2 }
   0x7   :  { %476 = vmatpush.msra.mxu2 %v47_v2  ;;  %477 = vmatpush.msra.mxu3 %v47_v2 }
   0x8   :  { %160 = vmatpush.msra.mxu0 %v46_v3  ;;  %478 = vmatpush.msra.mxu1 %v46_v3 }
   0x9   :  { %7 = vsyncpa [#allocation3], 0  ;;  %479 = vmatpush.msra.mxu2 %v46_v3  ;;  %480 = vmatpush.msra.mxu3 %v46_v3  ;;  %v44_v5 = vld [vmem:[%s684_s1] sm:$0xff]  ;;  %vm50_vm0 = vcmask 392192   ;;  %v13_v10 = vld [vmem:[%s683_s0 + $0x8] sm:$0xff]  ;;  %s330_s29 = sshll.u32 %s685_s2, 4  ;;  %s331_s29 = int_to_ptr.hbm [resolvable:$true] %s330_s29 }
   0xa   :  { %161 = vmatpush.msra.mxu0 %v45_v4  ;;  %481 = vmatpush.msra.mxu1 %v45_v4  ;;  %v12_v6 = vld [vmem:[%s683_s0] sm:$0xff]  ;;  %v21_v11 = vld [vmem:[%s683_s0 + $0x48] sm:$0xff]  ;;  %v14_v14 = vld [vmem:[%s683_s0 + $0x10] sm:$0xff]  ;;  %s517_s30 = smov 64   ;;  %s518_s3 = smov 4  }
   0xb   :  { %482 = vmatpush.msra.mxu2 %v45_v4  ;;  %483 = vmatpush.msra.mxu3 %v45_v4  ;;  %v20_v7 = vld [vmem:[%s683_s0 + $0x40] sm:$0xff]  ;;  %v29_v12 = vld [vmem:[%s683_s0 + $0x88] sm:$0xff]  ;;  %v22_v15 = vld [vmem:[%s683_s0 + $0x50] sm:$0xff] }
   0xc   :  { %162 = vmatpush.msra.mxu0 %v44_v5  ;;  %484 = vmatpush.msra.mxu1 %v44_v5  ;;  %v28_v8 = vld [vmem:[%s683_s0 + $0x80] sm:$0xff]  ;;  %v37_v13 = vld [vmem:[%s683_s0 + $0xc8] sm:$0xff]  ;;  %v30_v16 = vld [vmem:[%s683_s0 + $0x90] sm:$0xff] }
   0xd   :  { %v36_v9 = vld [vmem:[%s683_s0 + $0xc0] sm:$0xff]  ;;  %485 = vmatpush.msra.mxu2 %v44_v5  ;;  %486 = vmatpush.msra.mxu3 %v44_v5  ;;  %v38_v17 = vld [vmem:[%s683_s0 + $0xd0] sm:$0xff]  ;;  %v15_v18 = vld [vmem:[%s683_s0 + $0x18] sm:$0xff] }
   0xe   :  { %342 = vmatmul.msk.f32.vlgmr.msra.gmra.mxu0 %vm50_vm0, %v12_v6  ;;  %350 = vmatmul.msk.f32.vlgmr.msra.gmra.mxu1 %vm50_vm0, %v20_v7  ;;  %v23_v19 = vld [vmem:[%s683_s0 + $0x58] sm:$0xff]  ;;  %v16_v22 = vld [vmem:[%s683_s0 + $0x20] sm:$0xff]  ;;  %v17_v26 = vld [vmem:[%s683_s0 + $0x28] sm:$0xff] }
   0xf   :  { %358 = vmatmul.msk.f32.vlgmr.msra.gmra.mxu2 %vm50_vm0, %v28_v8  ;;  %366 = vmatmul.msk.f32.vlgmr.msra.gmra.mxu3 %vm50_vm0, %v36_v9  ;;  %v31_v20 = vld [vmem:[%s683_s0 + $0x98] sm:$0xff]  ;;  %v24_v23 = vld [vmem:[%s683_s0 + $0x60] sm:$0xff]  ;;  %v25_v27 = vld [vmem:[%s683_s0 + $0x68] sm:$0xff] }
  0x10   :  { %v39_v21 = vld [vmem:[%s683_s0 + $0xd8] sm:$0xff]  ;;  %v32_v24 = vld [vmem:[%s683_s0 + $0xa0] sm:$0xff]  ;;  %v33_v28 = vld [vmem:[%s683_s0 + $0xa8] sm:$0xff] }
  0x11   :  { %v40_v25 = vld [vmem:[%s683_s0 + $0xe0] sm:$0xff]  ;;  %v41_v29 = vld [vmem:[%s683_s0 + $0xe8] sm:$0xff]  ;;  %v18_v30 = vld [vmem:[%s683_s0 + $0x30] sm:$0xff] }
  0x12   :  { %v26_v31 = vld [vmem:[%s683_s0 + $0x70] sm:$0xff]  ;;  %v19_v34 = vld [vmem:[%s683_s0 + $0x38] sm:$0xff] }
  0x13   :  { %v34_v32 = vld [vmem:[%s683_s0 + $0xb0] sm:$0xff]  ;;  %v27_v35 = vld [vmem:[%s683_s0 + $0x78] sm:$0xff] }
  0x14   :  { %v42_v33 = vld [vmem:[%s683_s0 + $0xf0] sm:$0xff]  ;;  %v35_v36 = vld [vmem:[%s683_s0 + $0xb8] sm:$0xff] }
  0x15   :  { %v43_v37 = vld [vmem:[%s683_s0 + $0xf8] sm:$0xff]  ;;  %s516_s0 = smov [#allocation2]  }
  0x16   :  { %343 = vmatmul.msk.f32.gmra.mxu0 %vm50_vm0, %v13_v10  ;;  %351 = vmatmul.msk.f32.gmra.mxu1 %vm50_vm0, %v21_v11  ;;  %s328_s1 = sshll.u32 %s516_s0, 4  ;;  %s329_s1 = int_to_ptr.vmem [resolvable:$true] %s328_s1 }
  0x17   :  { %359 = vmatmul.msk.f32.gmra.mxu2 %vm50_vm0, %v29_v12  ;;  %367 = vmatmul.msk.f32.gmra.mxu3 %vm50_vm0, %v37_v13 }
  0x1e   :  { %344 = vmatmul.msk.f32.gmra.mxu0 %vm50_vm0, %v14_v14  ;;  %352 = vmatmul.msk.f32.gmra.mxu1 %vm50_vm0, %v22_v15 }
  0x1f   :  { %360 = vmatmul.msk.f32.gmra.mxu2 %vm50_vm0, %v30_v16  ;;  %368 = vmatmul.msk.f32.gmra.mxu3 %vm50_vm0, %v38_v17 }
  0x26   :  { %345 = vmatmul.msk.f32.gmra.mxu0 %vm50_vm0, %v15_v18  ;;  %353 = vmatmul.msk.f32.gmra.mxu1 %vm50_vm0, %v23_v19 }
  0x27   :  { %361 = vmatmul.msk.f32.gmra.mxu2 %vm50_vm0, %v31_v20  ;;  %369 = vmatmul.msk.f32.gmra.mxu3 %vm50_vm0, %v39_v21 }
  0x2e   :  { %346 = vmatmul.msk.f32.gmra.mxu0 %vm50_vm0, %v16_v22  ;;  %354 = vmatmul.msk.f32.gmra.mxu1 %vm50_vm0, %v24_v23 }
  0x2f   :  { %362 = vmatmul.msk.f32.gmra.mxu2 %vm50_vm0, %v32_v24  ;;  %370 = vmatmul.msk.f32.gmra.mxu3 %vm50_vm0, %v40_v25 }
  0x36   :  { %347 = vmatmul.msk.f32.gmra.mxu0 %vm50_vm0, %v17_v26  ;;  %355 = vmatmul.msk.f32.gmra.mxu1 %vm50_vm0, %v25_v27 }
  0x37   :  { %363 = vmatmul.msk.f32.gmra.mxu2 %vm50_vm0, %v33_v28  ;;  %371 = vmatmul.msk.f32.gmra.mxu3 %vm50_vm0, %v41_v29 }
  0x3e   :  { %348 = vmatmul.msk.f32.gmra.mxu0 %vm50_vm0, %v18_v30  ;;  %356 = vmatmul.msk.f32.gmra.mxu1 %vm50_vm0, %v26_v31 }
  0x3f   :  { %364 = vmatmul.msk.f32.gmra.mxu2 %vm50_vm0, %v34_v32  ;;  %372 = vmatmul.msk.f32.gmra.mxu3 %vm50_vm0, %v42_v33 }
  0x46   :  { %349 = vmatmul.msk.f32.gmra.mxu0 %vm50_vm0, %v19_v34  ;;  %357 = vmatmul.msk.f32.gmra.mxu1 %vm50_vm0, %v27_v35 }
  0x47   :  { %365 = vmatmul.msk.f32.gmra.mxu2 %vm50_vm0, %v35_v36  ;;  %373 = vmatmul.msk.f32.gmra.mxu3 %vm50_vm0, %v43_v37 }
  0x8b   :  { %v164_v38 = vpop.f32.mrf.mxu0  ;;  %v188_v39 = vpop.f32.mrf.mxu1 }
  0x92   :  { %v212_v40 = vpop.f32.mrf.mxu2  ;;  %v236_v41 = vpop.f32.mrf.mxu3 }
  0x93   :  { %v167_v42 = vpop.f32.mrf.mxu0  ;;  %v191_v43 = vpop.f32.mrf.mxu1 }
  0x94   :  { %v377_v44 = vpack.c.bf16 %v167_v42, %v164_v38  ;;  %v397_v45 = vpack.c.bf16 %v191_v43, %v188_v39 }
  0x96   :  { %378 = vst [vmem:[#allocation2] sm:$0xff] %v377_v44  }
  0x97   :  { %457 = vst [vmem:[#allocation2 + $0x20] sm:$0xff] %v397_v45  }
  0x9a   :  { %v215_v46 = vpop.f32.mrf.mxu2  ;;  %v239_v47 = vpop.f32.mrf.mxu3 }
  0x9b   :  { %v417_v48 = vpack.c.bf16 %v215_v46, %v212_v40  ;;  %v437_v49 = vpack.c.bf16 %v239_v47, %v236_v41  ;;  %v170_v50 = vpop.f32.mrf.mxu0  ;;  %v194_v51 = vpop.f32.mrf.mxu1 }
  0x9d   :  { %461 = vst [vmem:[#allocation2 + $0x40] sm:$0xff] %v417_v48  }
  0x9e   :  { %465 = vst [vmem:[#allocation2 + $0x60] sm:$0xff] %v437_v49  }
  0xa2   :  { %v218_v52 = vpop.f32.mrf.mxu2  ;;  %v242_v53 = vpop.f32.mrf.mxu3 }
  0xa3   :  { %v173_v54 = vpop.f32.mrf.mxu0  ;;  %v197_v55 = vpop.f32.mrf.mxu1 }
  0xa4   :  { %v382_v56 = vpack.c.bf16 %v173_v54, %v170_v50  ;;  %v402_v57 = vpack.c.bf16 %v197_v55, %v194_v51 }
  0xa6   :  { %454 = vst [vmem:[#allocation2 + $0x8] sm:$0xff] %v382_v56  }
  0xa7   :  { %458 = vst [vmem:[#allocation2 + $0x28] sm:$0xff] %v402_v57  }
  0xaa   :  { %v221_v58 = vpop.f32.mrf.mxu2  ;;  %v245_v59 = vpop.f32.mrf.mxu3 }
  0xab   :  { %v422_v60 = vpack.c.bf16 %v221_v58, %v218_v52  ;;  %v442_v61 = vpack.c.bf16 %v245_v59, %v242_v53  ;;  %v176_v62 = vpop.f32.mrf.mxu0  ;;  %v200_v63 = vpop.f32.mrf.mxu1 }
  0xad   :  { %462 = vst [vmem:[#allocation2 + $0x48] sm:$0xff] %v422_v60  }
  0xae   :  { %466 = vst [vmem:[#allocation2 + $0x68] sm:$0xff] %v442_v61  }
  0xb2   :  { %v224_v0 = vpop.f32.mrf.mxu2  ;;  %v248_v1 = vpop.f32.mrf.mxu3 }
  0xb3   :  { %v179_v2 = vpop.f32.mrf.mxu0  ;;  %v203_v3 = vpop.f32.mrf.mxu1 }
  0xb4   :  { %v387_v4 = vpack.c.bf16 %v179_v2, %v176_v62  ;;  %v407_v5 = vpack.c.bf16 %v203_v3, %v200_v63 }
  0xb6   :  { %455 = vst [vmem:[#allocation2 + $0x10] sm:$0xff] %v387_v4  }
  0xb7   :  { %459 = vst [vmem:[#allocation2 + $0x30] sm:$0xff] %v407_v5  }
  0xba   :  { %v227_v6 = vpop.f32.mrf.mxu2  ;;  %v251_v7 = vpop.f32.mrf.mxu3 }
  0xbb   :  { %v427_v8 = vpack.c.bf16 %v227_v6, %v224_v0  ;;  %v447_v9 = vpack.c.bf16 %v251_v7, %v248_v1  ;;  %v182_v10 = vpop.f32.mrf.mxu0  ;;  %v206_v11 = vpop.f32.mrf.mxu1 }
  0xbd   :  { %463 = vst [vmem:[#allocation2 + $0x50] sm:$0xff] %v427_v8  }
  0xbe   :  { %467 = vst [vmem:[#allocation2 + $0x70] sm:$0xff] %v447_v9  }
  0xc2   :  { %v230_v12 = vpop.f32.mrf.mxu2  ;;  %v254_v13 = vpop.f32.mrf.mxu3 }
  0xc3   :  { %v185_v14 = vpop.f32.mrf.mxu0  ;;  %v209_v15 = vpop.f32.mrf.mxu1 }
  0xc4   :  { %v392_v16 = vpack.c.bf16 %v185_v14, %v182_v10  ;;  %v412_v17 = vpack.c.bf16 %v209_v15, %v206_v11 }
  0xc6   :  { %456 = vst [vmem:[#allocation2 + $0x18] sm:$0xff] %v392_v16  }
  0xc7   :  { %460 = vst [vmem:[#allocation2 + $0x38] sm:$0xff] %v412_v17  }
  0xca   :  { %v233_v18 = vpop.f32.mrf.mxu2  ;;  %v257_v19 = vpop.f32.mrf.mxu3 }
  0xcb   :  { %v432_v20 = vpack.c.bf16 %v233_v18, %v230_v12  ;;  %v452_v21 = vpack.c.bf16 %v257_v19, %v254_v13 }
  0xcd   :  { %464 = vst [vmem:[#allocation2 + $0x58] sm:$0xff] %v432_v20  }
  0xce   :  { %468 = vst [vmem:[#allocation2 + $0x78] sm:$0xff] %v452_v21  }
  0xcf   :  { %336 = dma.vmem_to_hbm [thread:$0]  %s329_s1, 2048, %s331_s29, [#allocation3], %s517_s30, %s517_s30, %s518_s3  }
  0xd0   :  { %514 = dma.done.wait [#allocation3], 2048  }
  0xd1   :  { %515 = vsyncadd [#allocation3], 4294965248 }
  0xd2   :  { %341 = vsyncpa [#allocation3], 1 }

</bundles_post_ra>
